<compile_context>
chip_gen: v7x
topology: tpu7x:2x2x1
jax: 0.10.0
libtpu: 0.0.40
codegen_flags: <defaults>
</compile_context>

<pallas_src>
import math

import numpy as np
import jax
import jax.numpy as jnp
from jax.experimental import pallas as pl
from jax.experimental.pallas import tpu as pltpu

N = 2            # batch (hard-wired into the merged lane layout)
C = 4            # input channels
L = 60           # sequence length (AvgPool1d(60) + .squeeze(2) implies L == 60)
H4 = 32          # conv1d_4 output channels
H5 = 2           # conv1d_5 output channels
NB = 3           # depthwise branches (kernel sizes 5, 9, 59)
LB = 64          # per-(batch, branch) lane block: 0 pad, 1..60 data, 61..63 pad/guard
LANES = N * LB   # 128
CC = NB * C      # 12 : conv1d_4 input channels (torch.cat order, branch-major)
WC_ROWS = 40     # 4 (stage-1 bias rows) + 32 (conv4 rows) + 2 (conv5 rows), padded
BN_EPS = 1e-5


# ----------------------------------------------------------------------------
# Kernel
# ----------------------------------------------------------------------------
def fcn_kernel(x_ref, t1_ref, wc_ref, out_ref):
    """Whole MyFCNModel.eval() forward in one invocation (N == 2, L == 60).

    x_ref  : (N, C, L)        f32   raw input (no wrapper-side relayout).
    t1_ref : (C, L, NB*LB)    bf16  per-channel Toeplitz fusing the 3 depthwise
                                    convs + eval-BN scale; guard columns are 0.
    wc_ref : (WC_ROWS, NB*LB) f32   packed constants:
               rows 0:4                stage-1 folded bias/shift (zero on pad lanes)
               rows 4:36,  cols 12k+   conv4 tap-k weights (BN folded), col 36 bias
               rows 36:38, cols 32k+   conv5 tap-k weights (BN folded), col 96 bias
    out_ref: (N, H5)          f32   log-probabilities, batch-major.
    """
    x = x_ref[...]                                   # (2, 4, 60) f32
    wc = wc_ref[...]                                 # (40, 192)  f32

    b1 = wc[0:C, :]                                  # (4, 192)  zero at pad/guard lanes
    b4 = wc[C:C + H4, CC * 3:CC * 3 + 1]             # (32, 1)
    b5 = wc[C + H4:C + H4 + H5, H4 * 3:H4 * 3 + 1]   # (2, 1)

    # Data-lane mask: 1 where (lane % 64) in [1, 60], 0 at pad/guard lanes.
    lane = jax.lax.broadcasted_iota(jnp.int32, (1, LANES), 1)
    pos = lane % LB
    dmask = ((pos >= 1) & (pos <= L)).astype(jnp.float32)            # (1, 128)

    # --- Stage 1: 3x (depthwise Conv1d + BN(eval) + ReLU) as 4 Toeplitz dots --
    y1 = []
    for c in range(C):                               # static, 4 iterations
        xc = x[:, c, :].astype(jnp.bfloat16)         # (2, 60) bf16
        yc = jnp.dot(xc, t1_ref[c], preferred_element_type=jnp.float32)   # (2, 192)
        y1.append(jnp.maximum(yc + b1[c:c + 1, :], 0.0))  # guards stay exactly 0

    # --- One-time relayout to the merged-batch layout: rows = branch*C + c
    #     (torch.cat order), lanes = 64*n + padded position.  Replaces the
    #     per-batch Python loop of the previous version.
    left = jnp.concatenate([y1[c][0:1, :] for c in range(C)], axis=0)    # (4, 192)  n=0
    right = jnp.concatenate([y1[c][1:2, :] for c in range(C)], axis=0)   # (4, 192)  n=1
    yp = jnp.concatenate(
        [jnp.concatenate([left[:, b * LB:(b + 1) * LB],
                          right[:, b * LB:(b + 1) * LB]], axis=1)
         for b in range(NB)], axis=0)                                    # (12, 128)

    def conv3tap(v, w0, w1, w2):
        # 3-tap conv (padding=1) on each 64-lane batch block: tap-shifted dots,
        # no materialized im2col.  Pad/guard lanes of the result are garbage and
        # must be masked by the caller.
        zc = jnp.zeros((v.shape[0], 1), jnp.float32)
        vm = jnp.concatenate([zc, v[:, :LANES - 1]], axis=1)   # [:, j] = v[:, j-1]
        vp = jnp.concatenate([v[:, 1:], zc], axis=1)           # [:, j] = v[:, j+1]
        return (jnp.dot(w0, vm, preferred_element_type=jnp.float32)
                + jnp.dot(w1, v, preferred_element_type=jnp.float32)
                + jnp.dot(w2, vp, preferred_element_type=jnp.float32))

    # --- conv1d_4 + BN + ReLU, both batch items in one shot -------------------
    w4 = [wc[C:C + H4, CC * k:CC * (k + 1)] for k in range(3)]           # 3 x (32, 12)
    h4 = jnp.maximum(conv3tap(yp, *w4) + b4, 0.0) * dmask                # (32, 128)

    # --- conv1d_5 + BN + ReLU --------------------------------------------------
    w5 = [wc[C + H4:C + H4 + H5, H4 * k:H4 * (k + 1)] for k in range(3)] # 3 x (2, 32)
    h5 = jnp.maximum(conv3tap(h4, *w5) + b5, 0.0) * dmask                # (2, 128)

    # --- AvgPool1d(60) + squeeze(2), then log_softmax over the class axis ------
    inv = 1.0 / L
    rows = []
    for n in range(N):                               # static, 2 iterations
        cls = [jnp.sum(h5[o:o + 1, n * LB:(n + 1) * LB], axis=1, keepdims=True)
               for o in range(H5)]
        rows.append(jnp.concatenate(cls, axis=1) * inv)                  # (1, H5)
    z = jnp.concatenate(rows, axis=0)                                    # (N, H5) batch-major
    m = jnp.max(z, axis=1, keepdims=True)
    lse = jnp.log(jnp.sum(jnp.exp(z - m), axis=1, keepdims=True)) + m
    out_ref[...] = z - lse


# ----------------------------------------------------------------------------
# Parameter packing (host side, once at make_forward time)
# ----------------------------------------------------------------------------
def _build_t1(params):
    """(C, L, NB*LB) bf16 Toeplitz fusing the 3 depthwise convs + eval-BN scale."""
    t1 = np.zeros((C, L, NB * LB), np.float32)
    branches = (("c1", "bn1", 5, 2), ("c2", "bn2", 9, 4), ("c3", "bn3", 59, 29))
    for b, (cn, bn, K, P) in enumerate(branches):
        w = np.asarray(params[cn + "_w"])            # (C, K)
        s = np.asarray(params[bn + "_s"])[:, 0]      # (C,)
        for c in range(C):
            for l in range(L):
                col = b * LB + 1 + l
                for k in range(K):
                    m = l + k - P                    # cross-correlation index
                    if 0 <= m < L:
                        t1[c, m, col] += s[c] * w[c, k]
    return jnp.asarray(t1, dtype=jnp.bfloat16)       # zeros stay exact in bf16


def _build_wc(params):
    """(WC_ROWS, NB*LB) f32 packed: stage-1 bias rows, conv4/conv5 tap weights + biases."""
    wc = np.zeros((WC_ROWS, NB * LB), np.float32)
    # stage-1 folded bias/shift, written only on data lanes (guards stay 0)
    for b, (cn, bn) in enumerate((("c1", "bn1"), ("c2", "bn2"), ("c3", "bn3"))):
        bi = np.asarray(params[cn + "_b"])[:, 0]
        s = np.asarray(params[bn + "_s"])[:, 0]
        t = np.asarray(params[bn + "_t"])[:, 0]
        for c in range(C):
            wc[c, b * LB + 1:b * LB + 1 + L] = s[c] * bi[c] + t[c]
    # conv4 (input channel order = branch*C + c, matching torch.cat)
    w4 = np.asarray(params["c4_w"])                  # (32, 12, 3)
    b4 = np.asarray(params["c4_b"])[:, 0]
    s4 = np.asarray(params["bn4_s"])[:, 0]
    t4 = np.asarray(params["bn4_t"])[:, 0]
    for k in range(3):
        wc[C:C + H4, CC * k:CC * (k + 1)] = s4[:, None] * w4[:, :, k]
    wc[C:C + H4, CC * 3] = s4 * b4 + t4
    # conv5
    w5 = np.asarray(params["c5_w"])                  # (2, 32, 3)
    b5 = np.asarray(params["c5_b"])[:, 0]
    s5 = np.asarray(params["bn5_s"])[:, 0]
    t5 = np.asarray(params["bn5_t"])[:, 0]
    for k in range(3):
        wc[C + H4:C + H4 + H5, H4 * k:H4 * (k + 1)] = s5[:, None] * w5[:, :, k]
    wc[C + H4:C + H4 + H5, H4 * 3] = s5 * b5 + t5
    return jnp.asarray(wc)


# ----------------------------------------------------------------------------
# Deterministic parameter init mirroring the PyTorch module's shapes
# ----------------------------------------------------------------------------
def init_params(key):
    keys = iter(jax.random.split(key, 32))

    def unif(shape, bound):
        return jax.random.uniform(next(keys), shape, jnp.float32, -bound, bound)

    params = {}
    for name, K in (("c1", 5), ("c2", 9), ("c3", 59)):        # depthwise (C,1,K) -> (C,K)
        bound = 1.0 / math.sqrt(K)
        params[name + "_w"] = unif((C, K), bound)
        params[name + "_b"] = unif((C, 1), bound)
    bound = 1.0 / math.sqrt(3 * C * 3)
    params["c4_w"] = unif((H4, 3 * C, 3), bound)
    params["c4_b"] = unif((H4, 1), bound)
    bound = 1.0 / math.sqrt(H4 * 3)
    params["c5_w"] = unif((H5, H4, 3), bound)
    params["c5_b"] = unif((H5, 1), bound)

    def bn(ch):   # eval-mode BatchNorm folded to per-channel scale / shift
        g = jax.random.uniform(next(keys), (ch, 1), jnp.float32, 0.5, 1.5)
        b = 0.1 * jax.random.normal(next(keys), (ch, 1), jnp.float32)
        rm = 0.1 * jax.random.normal(next(keys), (ch, 1), jnp.float32)
        rv = jax.random.uniform(next(keys), (ch, 1), jnp.float32, 0.5, 1.5)
        scale = g / jnp.sqrt(rv + BN_EPS)
        shift = b - rm * scale
        return scale, shift

    for i, ch in zip(range(1, 6), (C, C, C, H4, H5)):
        params[f"bn{i}_s"], params[f"bn{i}_t"] = bn(ch)
    return params


# ----------------------------------------------------------------------------
# Forward wrapper
# ----------------------------------------------------------------------------
def make_forward(params):
    t1 = _build_t1(params)     # (4, 60, 192) bf16  (~92 KB; dominant weight DMA, halved vs f32)
    wc = _build_wc(params)     # (40, 192)    f32   (~30 KB)

    call = pl.pallas_call(
        fcn_kernel,
        out_shape=jax.ShapeDtypeStruct((N, H5), jnp.float32),
        in_specs=[pl.BlockSpec(memory_space=pltpu.MemorySpace.VMEM)] * 3,
        out_specs=pl.BlockSpec(memory_space=pltpu.MemorySpace.VMEM),
    )

    @jax.jit
    def forward(x):
        # No wrapper-side relayout / transpose / .T: the kernel consumes (N,C,L)
        # and emits (N, H5) directly.
        return call(x.astype(jnp.float32), t1, wc)

    return forward


# ----------------------------------------------------------------------------
# Pure-JAX reference (same eval semantics) for a structural correctness check
# ----------------------------------------------------------------------------
def ref_forward(params, x):
    def block(x, w, b, s, t, groups, pad):
        out = jax.lax.conv_general_dilated(
            x, w, window_strides=(1,), padding=[(pad, pad)],
            dimension_numbers=("NCH", "OIH", "NCH"),
            feature_group_count=groups)
        out = out + b.reshape(1, -1, 1)
        out = out * s.reshape(1, -1, 1) + t.reshape(1, -1, 1)
        return jnp.maximum(out, 0.0)

    x1 = block(x, params["c1_w"].reshape(C, 1, 5), params["c1_b"],
               params["bn1_s"], params["bn1_t"], C, 2)
    x2 = block(x, params["c2_w"].reshape(C, 1, 9), params["c2_b"],
               params["bn2_s"], params["bn2_t"], C, 4)
    x3 = block(x, params["c3_w"].reshape(C, 1, 59), params["c3_b"],
               params["bn3_s"], params["bn3_t"], C, 29)
    xc = jnp.concatenate([x1, x2, x3], axis=1)
    x4 = block(xc, params["c4_w"], params["c4_b"],
               params["bn4_s"], params["bn4_t"], 1, 1)
    x5 = block(x4, params["c5_w"], params["c5_b"],
               params["bn5_s"], params["bn5_t"], 1, 1)
    z = jnp.mean(x5, axis=-1)
    return jax.nn.log_softmax(z, axis=1)


if __name__ == "__main__":
    params = init_params(jax.random.PRNGKey(123))   # mirrors torch.manual_seed(123) (deterministic, not bitwise)
    x = jax.random.normal(jax.random.PRNGKey(0), (N, C, L), jnp.float32)

    forward = make_forward(params)
    out = jax.block_until_ready(forward(x))

    assert out.shape == (N, H5), out.shape
    assert bool(jnp.all(jnp.isfinite(out)))
    # log_softmax rows must exponentiate-sum to 1.
    assert bool(jnp.allclose(jnp.sum(jnp.exp(out), axis=1), 1.0, atol=1e-4))
    # Structural check against a pure-JAX reference of the same eval forward.
    ref = ref_forward(params, x)
    assert bool(jnp.max(jnp.abs(out - ref)) < 5e-2), (out, ref)

    print("KERNEL_OK")
</pallas_src>

<mosaic_0001>
module attributes {stable_mosaic.version = 11 : i64} {
  func.func @fcn_kernel(%arg0: memref<2x4x60xf32, #tpu.memory_space<vmem>>, %arg1: memref<4x60x192xbf16, #tpu.memory_space<vmem>>, %arg2: memref<40x192xf32, #tpu.memory_space<vmem>>, %arg3: memref<2x2xf32, #tpu.memory_space<vmem>>) attributes {dimension_semantics = [], scalar_prefetch = 0 : i64, scratch_operands = 0 : i64, tpu.core_type = #tpu.core_type<tc>} {
    %c0 = arith.constant 0 : index
    %c0_0 = arith.constant 0 : index
    %c0_1 = arith.constant 0 : index
    %0 = vector.load %arg0[%c0, %c0_0, %c0_1] : memref<2x4x60xf32, #tpu.memory_space<vmem>>, vector<2x4x60xf32>
    %c0_2 = arith.constant 0 : index
    %c0_3 = arith.constant 0 : index
    %1 = vector.load %arg2[%c0_2, %c0_3] : memref<40x192xf32, #tpu.memory_space<vmem>>, vector<40x192xf32>
    %2 = vector.extract_strided_slice %1 {offsets = [0, 0], sizes = [4, 192], strides = [1, 1]} : vector<40x192xf32> to vector<4x192xf32>
    %3 = vector.extract_strided_slice %1 {offsets = [4, 36], sizes = [32, 1], strides = [1, 1]} : vector<40x192xf32> to vector<32x1xf32>
    %4 = vector.extract_strided_slice %1 {offsets = [36, 96], sizes = [2, 1], strides = [1, 1]} : vector<40x192xf32> to vector<2x1xf32>
    %5 = tpu.iota {dimensions = array<i32: 1>} : vector<1x128xi32>
    %c64_i32 = arith.constant 64 : i32
    %c0_i32 = arith.constant 0 : i32
    %6 = arith.cmpi eq, %c64_i32, %c0_i32 : i32
    %c1_i32 = arith.constant 1 : i32
    %7 = arith.select %6, %c1_i32, %c64_i32 : i32
    %8 = vector.broadcast %7 : i32 to vector<1x128xi32>
    %9 = arith.remsi %5, %8 : vector<1x128xi32>
    %c0_i32_4 = arith.constant 0 : i32
    %10 = vector.broadcast %c0_i32_4 : i32 to vector<1x128xi32>
    %11 = arith.cmpi ne, %9, %10 : vector<1x128xi32>
    %c0_i32_5 = arith.constant 0 : i32
    %12 = vector.broadcast %c0_i32_5 : i32 to vector<1x128xi32>
    %13 = arith.cmpi slt, %9, %12 : vector<1x128xi32>
    %c0_i32_6 = arith.constant 0 : i32
    %14 = arith.cmpi slt, %7, %c0_i32_6 : i32
    %15 = vector.broadcast %14 : i1 to vector<1x128xi1>
    %16 = vector.broadcast %15 : vector<1x128xi1> to vector<1x128xi1>
    %17 = arith.xori %13, %16 : vector<1x128xi1>
    %18 = arith.andi %17, %11 : vector<1x128xi1>
    %19 = vector.broadcast %7 : i32 to vector<1x128xi32>
    %20 = arith.addi %9, %19 : vector<1x128xi32>
    %21 = arith.select %18, %20, %9 : vector<1x128xi1>, vector<1x128xi32>
    %c1_i32_7 = arith.constant 1 : i32
    %22 = vector.broadcast %c1_i32_7 : i32 to vector<1x128xi32>
    %23 = arith.cmpi sge, %21, %22 : vector<1x128xi32>
    %c60_i32 = arith.constant 60 : i32
    %24 = vector.broadcast %c60_i32 : i32 to vector<1x128xi32>
    %25 = arith.cmpi sle, %21, %24 : vector<1x128xi32>
    %26 = arith.andi %23, %25 : vector<1x128xi1>
    %27 = arith.extui %26 : vector<1x128xi1> to vector<1x128xi32>
    %28 = arith.sitofp %27 : vector<1x128xi32> to vector<1x128xf32>
    %29 = vector.extract_strided_slice %0 {offsets = [0, 0, 0], sizes = [2, 1, 60], strides = [1, 1, 1]} : vector<2x4x60xf32> to vector<2x1x60xf32>
    %30 = vector.shape_cast %29 : vector<2x1x60xf32> to vector<2x60xf32>
    %31 = arith.truncf %30 : vector<2x60xf32> to vector<2x60xbf16>
    %c0_8 = arith.constant 0 : index
    %c0_9 = arith.constant 0 : index
    %c0_10 = arith.constant 0 : index
    %32 = vector.load %arg1[%c0_8, %c0_9, %c0_10] : memref<4x60x192xbf16, #tpu.memory_space<vmem>>, vector<1x60x192xbf16>
    %33 = vector.shape_cast %32 : vector<1x60x192xbf16> to vector<60x192xbf16>
    %cst = arith.constant dense<0.000000e+00> : vector<2x192xf32>
    %34 = tpu.matmul %31, %33, %cst {dimension_numbers = #tpu.dot_dimension_numbers<[1], [0], [0], [1], [0, 0, 1, 1], [], []>} : vector<2x60xbf16>, vector<60x192xbf16>, vector<2x192xf32> -> vector<2x192xf32>
    %35 = vector.extract_strided_slice %2 {offsets = [0, 0], sizes = [1, 192], strides = [1, 1]} : vector<4x192xf32> to vector<1x192xf32>
    %36 = vector.broadcast %35 : vector<1x192xf32> to vector<2x192xf32>
    %37 = arith.addf %34, %36 : vector<2x192xf32>
    %cst_11 = arith.constant 0.000000e+00 : f32
    %38 = vector.broadcast %cst_11 : f32 to vector<2x192xf32>
    %39 = arith.maximumf %37, %38 : vector<2x192xf32>
    %40 = vector.extract_strided_slice %0 {offsets = [0, 1, 0], sizes = [2, 1, 60], strides = [1, 1, 1]} : vector<2x4x60xf32> to vector<2x1x60xf32>
    %41 = vector.shape_cast %40 : vector<2x1x60xf32> to vector<2x60xf32>
    %42 = arith.truncf %41 : vector<2x60xf32> to vector<2x60xbf16>
    %c1 = arith.constant 1 : index
    %c0_12 = arith.constant 0 : index
    %c0_13 = arith.constant 0 : index
    %43 = vector.load %arg1[%c1, %c0_12, %c0_13] : memref<4x60x192xbf16, #tpu.memory_space<vmem>>, vector<1x60x192xbf16>
    %44 = vector.shape_cast %43 : vector<1x60x192xbf16> to vector<60x192xbf16>
    %cst_14 = arith.constant dense<0.000000e+00> : vector<2x192xf32>
    %45 = tpu.matmul %42, %44, %cst_14 {dimension_numbers = #tpu.dot_dimension_numbers<[1], [0], [0], [1], [0, 0, 1, 1], [], []>} : vector<2x60xbf16>, vector<60x192xbf16>, vector<2x192xf32> -> vector<2x192xf32>
    %46 = vector.extract_strided_slice %2 {offsets = [1, 0], sizes = [1, 192], strides = [1, 1]} : vector<4x192xf32> to vector<1x192xf32>
    %47 = vector.broadcast %46 : vector<1x192xf32> to vector<2x192xf32>
    %48 = arith.addf %45, %47 : vector<2x192xf32>
    %cst_15 = arith.constant 0.000000e+00 : f32
    %49 = vector.broadcast %cst_15 : f32 to vector<2x192xf32>
    %50 = arith.maximumf %48, %49 : vector<2x192xf32>
    %51 = vector.extract_strided_slice %0 {offsets = [0, 2, 0], sizes = [2, 1, 60], strides = [1, 1, 1]} : vector<2x4x60xf32> to vector<2x1x60xf32>
    %52 = vector.shape_cast %51 : vector<2x1x60xf32> to vector<2x60xf32>
    %53 = arith.truncf %52 : vector<2x60xf32> to vector<2x60xbf16>
    %c2 = arith.constant 2 : index
    %c0_16 = arith.constant 0 : index
    %c0_17 = arith.constant 0 : index
    %54 = vector.load %arg1[%c2, %c0_16, %c0_17] : memref<4x60x192xbf16, #tpu.memory_space<vmem>>, vector<1x60x192xbf16>
    %55 = vector.shape_cast %54 : vector<1x60x192xbf16> to vector<60x192xbf16>
    %cst_18 = arith.constant dense<0.000000e+00> : vector<2x192xf32>
    %56 = tpu.matmul %53, %55, %cst_18 {dimension_numbers = #tpu.dot_dimension_numbers<[1], [0], [0], [1], [0, 0, 1, 1], [], []>} : vector<2x60xbf16>, vector<60x192xbf16>, vector<2x192xf32> -> vector<2x192xf32>
    %57 = vector.extract_strided_slice %2 {offsets = [2, 0], sizes = [1, 192], strides = [1, 1]} : vector<4x192xf32> to vector<1x192xf32>
    %58 = vector.broadcast %57 : vector<1x192xf32> to vector<2x192xf32>
    %59 = arith.addf %56, %58 : vector<2x192xf32>
    %cst_19 = arith.constant 0.000000e+00 : f32
    %60 = vector.broadcast %cst_19 : f32 to vector<2x192xf32>
    %61 = arith.maximumf %59, %60 : vector<2x192xf32>
    %62 = vector.extract_strided_slice %0 {offsets = [0, 3, 0], sizes = [2, 1, 60], strides = [1, 1, 1]} : vector<2x4x60xf32> to vector<2x1x60xf32>
    %63 = vector.shape_cast %62 : vector<2x1x60xf32> to vector<2x60xf32>
    %64 = arith.truncf %63 : vector<2x60xf32> to vector<2x60xbf16>
    %c3 = arith.constant 3 : index
    %c0_20 = arith.constant 0 : index
    %c0_21 = arith.constant 0 : index
    %65 = vector.load %arg1[%c3, %c0_20, %c0_21] : memref<4x60x192xbf16, #tpu.memory_space<vmem>>, vector<1x60x192xbf16>
    %66 = vector.shape_cast %65 : vector<1x60x192xbf16> to vector<60x192xbf16>
    %cst_22 = arith.constant dense<0.000000e+00> : vector<2x192xf32>
    %67 = tpu.matmul %64, %66, %cst_22 {dimension_numbers = #tpu.dot_dimension_numbers<[1], [0], [0], [1], [0, 0, 1, 1], [], []>} : vector<2x60xbf16>, vector<60x192xbf16>, vector<2x192xf32> -> vector<2x192xf32>
    %68 = vector.extract_strided_slice %2 {offsets = [3, 0], sizes = [1, 192], strides = [1, 1]} : vector<4x192xf32> to vector<1x192xf32>
    %69 = vector.broadcast %68 : vector<1x192xf32> to vector<2x192xf32>
    %70 = arith.addf %67, %69 : vector<2x192xf32>
    %cst_23 = arith.constant 0.000000e+00 : f32
    %71 = vector.broadcast %cst_23 : f32 to vector<2x192xf32>
    %72 = arith.maximumf %70, %71 : vector<2x192xf32>
    %73 = vector.extract_strided_slice %39 {offsets = [0, 0], sizes = [1, 192], strides = [1, 1]} : vector<2x192xf32> to vector<1x192xf32>
    %74 = vector.extract_strided_slice %50 {offsets = [0, 0], sizes = [1, 192], strides = [1, 1]} : vector<2x192xf32> to vector<1x192xf32>
    %75 = vector.extract_strided_slice %61 {offsets = [0, 0], sizes = [1, 192], strides = [1, 1]} : vector<2x192xf32> to vector<1x192xf32>
    %76 = vector.extract_strided_slice %72 {offsets = [0, 0], sizes = [1, 192], strides = [1, 1]} : vector<2x192xf32> to vector<1x192xf32>
    %77 = tpu.concatenate %73, %74, %75, %76 in 0 : vector<1x192xf32>, vector<1x192xf32>, vector<1x192xf32>, vector<1x192xf32> -> vector<4x192xf32>
    %78 = vector.extract_strided_slice %39 {offsets = [1, 0], sizes = [1, 192], strides = [1, 1]} : vector<2x192xf32> to vector<1x192xf32>
    %79 = vector.extract_strided_slice %50 {offsets = [1, 0], sizes = [1, 192], strides = [1, 1]} : vector<2x192xf32> to vector<1x192xf32>
    %80 = vector.extract_strided_slice %61 {offsets = [1, 0], sizes = [1, 192], strides = [1, 1]} : vector<2x192xf32> to vector<1x192xf32>
    %81 = vector.extract_strided_slice %72 {offsets = [1, 0], sizes = [1, 192], strides = [1, 1]} : vector<2x192xf32> to vector<1x192xf32>
    %82 = tpu.concatenate %78, %79, %80, %81 in 0 : vector<1x192xf32>, vector<1x192xf32>, vector<1x192xf32>, vector<1x192xf32> -> vector<4x192xf32>
    %83 = vector.extract_strided_slice %77 {offsets = [0, 0], sizes = [4, 64], strides = [1, 1]} : vector<4x192xf32> to vector<4x64xf32>
    %84 = vector.extract_strided_slice %82 {offsets = [0, 0], sizes = [4, 64], strides = [1, 1]} : vector<4x192xf32> to vector<4x64xf32>
    %85 = tpu.concatenate %83, %84 in 1 : vector<4x64xf32>, vector<4x64xf32> -> vector<4x128xf32>
    %86 = vector.extract_strided_slice %77 {offsets = [0, 64], sizes = [4, 64], strides = [1, 1]} : vector<4x192xf32> to vector<4x64xf32>
    %87 = vector.extract_strided_slice %82 {offsets = [0, 64], sizes = [4, 64], strides = [1, 1]} : vector<4x192xf32> to vector<4x64xf32>
    %88 = tpu.concatenate %86, %87 in 1 : vector<4x64xf32>, vector<4x64xf32> -> vector<4x128xf32>
    %89 = vector.extract_strided_slice %77 {offsets = [0, 128], sizes = [4, 64], strides = [1, 1]} : vector<4x192xf32> to vector<4x64xf32>
    %90 = vector.extract_strided_slice %82 {offsets = [0, 128], sizes = [4, 64], strides = [1, 1]} : vector<4x192xf32> to vector<4x64xf32>
    %91 = tpu.concatenate %89, %90 in 1 : vector<4x64xf32>, vector<4x64xf32> -> vector<4x128xf32>
    %92 = tpu.concatenate %85, %88, %91 in 0 : vector<4x128xf32>, vector<4x128xf32>, vector<4x128xf32> -> vector<12x128xf32>
    %93 = vector.extract_strided_slice %1 {offsets = [4, 0], sizes = [32, 12], strides = [1, 1]} : vector<40x192xf32> to vector<32x12xf32>
    %94 = vector.extract_strided_slice %1 {offsets = [4, 12], sizes = [32, 12], strides = [1, 1]} : vector<40x192xf32> to vector<32x12xf32>
    %95 = vector.extract_strided_slice %1 {offsets = [4, 24], sizes = [32, 12], strides = [1, 1]} : vector<40x192xf32> to vector<32x12xf32>
    %cst_24 = arith.constant 0.000000e+00 : f32
    %96 = vector.broadcast %cst_24 : f32 to vector<12x1xf32>
    %97 = vector.extract_strided_slice %92 {offsets = [0, 0], sizes = [12, 127], strides = [1, 1]} : vector<12x128xf32> to vector<12x127xf32>
    %98 = tpu.concatenate %96, %97 in 1 : vector<12x1xf32>, vector<12x127xf32> -> vector<12x128xf32>
    %99 = vector.extract_strided_slice %92 {offsets = [0, 1], sizes = [12, 127], strides = [1, 1]} : vector<12x128xf32> to vector<12x127xf32>
    %100 = tpu.concatenate %99, %96 in 1 : vector<12x127xf32>, vector<12x1xf32> -> vector<12x128xf32>
    %cst_25 = arith.constant dense<0.000000e+00> : vector<32x128xf32>
    %101 = tpu.matmul %93, %98, %cst_25 {dimension_numbers = #tpu.dot_dimension_numbers<[1], [0], [0], [1], [0, 0, 1, 1], [], []>} : vector<32x12xf32>, vector<12x128xf32>, vector<32x128xf32> -> vector<32x128xf32>
    %cst_26 = arith.constant dense<0.000000e+00> : vector<32x128xf32>
    %102 = tpu.matmul %94, %92, %cst_26 {dimension_numbers = #tpu.dot_dimension_numbers<[1], [0], [0], [1], [0, 0, 1, 1], [], []>} : vector<32x12xf32>, vector<12x128xf32>, vector<32x128xf32> -> vector<32x128xf32>
    %103 = arith.addf %101, %102 : vector<32x128xf32>
    %cst_27 = arith.constant dense<0.000000e+00> : vector<32x128xf32>
    %104 = tpu.matmul %95, %100, %cst_27 {dimension_numbers = #tpu.dot_dimension_numbers<[1], [0], [0], [1], [0, 0, 1, 1], [], []>} : vector<32x12xf32>, vector<12x128xf32>, vector<32x128xf32> -> vector<32x128xf32>
    %105 = arith.addf %103, %104 : vector<32x128xf32>
    %106 = vector.broadcast %3 : vector<32x1xf32> to vector<32x128xf32>
    %107 = arith.addf %105, %106 : vector<32x128xf32>
    %cst_28 = arith.constant 0.000000e+00 : f32
    %108 = vector.broadcast %cst_28 : f32 to vector<32x128xf32>
    %109 = arith.maximumf %107, %108 : vector<32x128xf32>
    %110 = vector.broadcast %28 : vector<1x128xf32> to vector<32x128xf32>
    %111 = arith.mulf %109, %110 : vector<32x128xf32>
    %112 = vector.extract_strided_slice %1 {offsets = [36, 0], sizes = [2, 32], strides = [1, 1]} : vector<40x192xf32> to vector<2x32xf32>
    %113 = vector.extract_strided_slice %1 {offsets = [36, 32], sizes = [2, 32], strides = [1, 1]} : vector<40x192xf32> to vector<2x32xf32>
    %114 = vector.extract_strided_slice %1 {offsets = [36, 64], sizes = [2, 32], strides = [1, 1]} : vector<40x192xf32> to vector<2x32xf32>
    %cst_29 = arith.constant 0.000000e+00 : f32
    %115 = vector.broadcast %cst_29 : f32 to vector<32x1xf32>
    %116 = vector.extract_strided_slice %111 {offsets = [0, 0], sizes = [32, 127], strides = [1, 1]} : vector<32x128xf32> to vector<32x127xf32>
    %117 = tpu.concatenate %115, %116 in 1 : vector<32x1xf32>, vector<32x127xf32> -> vector<32x128xf32>
    %118 = vector.extract_strided_slice %111 {offsets = [0, 1], sizes = [32, 127], strides = [1, 1]} : vector<32x128xf32> to vector<32x127xf32>
    %119 = tpu.concatenate %118, %115 in 1 : vector<32x127xf32>, vector<32x1xf32> -> vector<32x128xf32>
    %cst_30 = arith.constant dense<0.000000e+00> : vector<2x128xf32>
    %120 = tpu.matmul %112, %117, %cst_30 {dimension_numbers = #tpu.dot_dimension_numbers<[1], [0], [0], [1], [0, 0, 1, 1], [], []>} : vector<2x32xf32>, vector<32x128xf32>, vector<2x128xf32> -> vector<2x128xf32>
    %cst_31 = arith.constant dense<0.000000e+00> : vector<2x128xf32>
    %121 = tpu.matmul %113, %111, %cst_31 {dimension_numbers = #tpu.dot_dimension_numbers<[1], [0], [0], [1], [0, 0, 1, 1], [], []>} : vector<2x32xf32>, vector<32x128xf32>, vector<2x128xf32> -> vector<2x128xf32>
    %122 = arith.addf %120, %121 : vector<2x128xf32>
    %cst_32 = arith.constant dense<0.000000e+00> : vector<2x128xf32>
    %123 = tpu.matmul %114, %119, %cst_32 {dimension_numbers = #tpu.dot_dimension_numbers<[1], [0], [0], [1], [0, 0, 1, 1], [], []>} : vector<2x32xf32>, vector<32x128xf32>, vector<2x128xf32> -> vector<2x128xf32>
    %124 = arith.addf %122, %123 : vector<2x128xf32>
    %125 = vector.broadcast %4 : vector<2x1xf32> to vector<2x128xf32>
    %126 = arith.addf %124, %125 : vector<2x128xf32>
    %cst_33 = arith.constant 0.000000e+00 : f32
    %127 = vector.broadcast %cst_33 : f32 to vector<2x128xf32>
    %128 = arith.maximumf %126, %127 : vector<2x128xf32>
    %129 = vector.broadcast %28 : vector<1x128xf32> to vector<2x128xf32>
    %130 = arith.mulf %128, %129 : vector<2x128xf32>
    %131 = vector.extract_strided_slice %130 {offsets = [0, 0], sizes = [1, 64], strides = [1, 1]} : vector<2x128xf32> to vector<1x64xf32>
    %cst_34 = arith.constant dense<0.000000e+00> : vector<1xf32>
    %132 = vector.multi_reduction <add>, %131, %cst_34 [1] : vector<1x64xf32> to vector<1xf32>
    %133 = vector.shape_cast %132 : vector<1xf32> to vector<1x1xf32>
    %134 = vector.extract_strided_slice %130 {offsets = [1, 0], sizes = [1, 64], strides = [1, 1]} : vector<2x128xf32> to vector<1x64xf32>
    %cst_35 = arith.constant dense<0.000000e+00> : vector<1xf32>
    %135 = vector.multi_reduction <add>, %134, %cst_35 [1] : vector<1x64xf32> to vector<1xf32>
    %136 = vector.shape_cast %135 : vector<1xf32> to vector<1x1xf32>
    %137 = tpu.concatenate %133, %136 in 1 : vector<1x1xf32>, vector<1x1xf32> -> vector<1x2xf32>
    %cst_36 = arith.constant 0.0166666675 : f32
    %138 = vector.broadcast %cst_36 : f32 to vector<1x2xf32>
    %139 = arith.mulf %137, %138 : vector<1x2xf32>
    %140 = vector.extract_strided_slice %130 {offsets = [0, 64], sizes = [1, 64], strides = [1, 1]} : vector<2x128xf32> to vector<1x64xf32>
    %cst_37 = arith.constant dense<0.000000e+00> : vector<1xf32>
    %141 = vector.multi_reduction <add>, %140, %cst_37 [1] : vector<1x64xf32> to vector<1xf32>
    %142 = vector.shape_cast %141 : vector<1xf32> to vector<1x1xf32>
    %143 = vector.extract_strided_slice %130 {offsets = [1, 64], sizes = [1, 64], strides = [1, 1]} : vector<2x128xf32> to vector<1x64xf32>
    %cst_38 = arith.constant dense<0.000000e+00> : vector<1xf32>
    %144 = vector.multi_reduction <add>, %143, %cst_38 [1] : vector<1x64xf32> to vector<1xf32>
    %145 = vector.shape_cast %144 : vector<1xf32> to vector<1x1xf32>
    %146 = tpu.concatenate %142, %145 in 1 : vector<1x1xf32>, vector<1x1xf32> -> vector<1x2xf32>
    %cst_39 = arith.constant 0.0166666675 : f32
    %147 = vector.broadcast %cst_39 : f32 to vector<1x2xf32>
    %148 = arith.mulf %146, %147 : vector<1x2xf32>
    %149 = tpu.concatenate %139, %148 in 0 : vector<1x2xf32>, vector<1x2xf32> -> vector<2x2xf32>
    %cst_40 = arith.constant dense<0xFF800000> : vector<2xf32>
    %150 = vector.multi_reduction <maximumf>, %149, %cst_40 [1] : vector<2x2xf32> to vector<2xf32>
    %151 = vector.shape_cast %150 : vector<2xf32> to vector<2x1xf32>
    %152 = vector.broadcast %151 : vector<2x1xf32> to vector<2x2xf32>
    %153 = arith.subf %149, %152 : vector<2x2xf32>
    %154 = math.exp %153 : vector<2x2xf32>
    %cst_41 = arith.constant dense<0.000000e+00> : vector<2xf32>
    %155 = vector.multi_reduction <add>, %154, %cst_41 [1] : vector<2x2xf32> to vector<2xf32>
    %156 = vector.shape_cast %155 : vector<2xf32> to vector<2x1xf32>
    %157 = math.log %156 : vector<2x1xf32>
    %158 = arith.addf %157, %151 : vector<2x1xf32>
    %159 = vector.broadcast %158 : vector<2x1xf32> to vector<2x2xf32>
    %160 = arith.subf %149, %159 : vector<2x2xf32>
    %c0_42 = arith.constant 0 : index
    %c0_43 = arith.constant 0 : index
    %161 = vector.load %arg3[%c0_42, %c0_43] : memref<2x2xf32, #tpu.memory_space<vmem>>, vector<2x2xf32>
    tpu.vector_store %arg3[%c0_42, %c0_43], %160 {strides = array<i32>} : memref<2x2xf32, #tpu.memory_space<vmem>>, vector<2x2xf32>,
    return
  }
}

</mosaic_0001>

<bundles_post_ra>
// kernel: forward.1
= control target key start
LH: loop header
LB: loop body
LE: loop exit
PB: predicated region body
PF: predicated region fallthrough
CT: control target
= control target key end

     0   :  { %8 = vsyncpa [#allocation3], 0  ;;  %s2003_s0 = inlined_call_operand.hbm [shape: f32[2,4,60], index: 0, kind: input, shape index: {}]   ;;  %s2004_s1 = inlined_call_operand.hbm [shape: bf16[4,60,192], index: 1, kind: input, shape index: {}]   ;;  %s2005_s2 = inlined_call_operand.hbm [shape: f32[40,192], index: 2, kind: input, shape index: {}]   ;;  %s2006_s3 = inlined_call_operand.hbm [shape: f32[2,2], index: 3, kind: output, shape index: {}]  }
   0x1   :  { %9 = vsyncpa [#allocation6], 0 }
   0x2   :  { %10 = vsyncpa [#allocation4], 0  ;;  %s1737_s12 = smov [#allocation5]   ;;  %s1643_s16 = scalar_lea.hbm %s2004_s1, 4096 }
   0x3   :  { %s28_s13 = sshll.u32 %s1737_s12, 4  ;;  %p1644_p0 = scmp.ne.s32.totalorder %s2004_s1, %s1643_s16  ;;  %s29_s13 = int_to_ptr.vmem [resolvable:$true] %s28_s13 }
   0x4   :  { %p1647_p1 = scmp.lt.u32.totalorder %s1643_s16, %s2004_s1 }
   0x6   :  { %p1649_p2 = pnand %p1647_p1, %p1644_p0 }
   0x8   :  { %1652 = shalt.err (!%p1649_p2)
}
   0x9   :  { %s1653_s21 = scalar_lea.vmem %s29_s13, 4096  ;;  %p1658_p4 = scmp.lt.s32.totalorder %s29_s13, %s29_s13 }
   0xa   :  { %p1654_p3 = scmp.ne.s32.totalorder %s29_s13, %s1653_s21  ;;  %p1659_p5 = scmp.lt.s32.totalorder %s1653_s21, %s1653_s21 }
   0xc   :  { %p1660_p6 = por %p1659_p5, %p1658_p4 }
   0xe   :  { %p1661_p7 = pnand %p1660_p6, %p1654_p3 }
  0x10   :  { %1664 = shalt.err (!%p1661_p7)
}
  0x11   :  { %s1738_s22 = smov 128   ;;  %s1739_s23 = smov 8  }
  0x12   :  { %34 = dma.hbm_to_vmem [thread:$0]  %s2004_s1, 4096, %s29_s13, [#allocation6], %s1738_s22, %s1738_s22, %s1739_s23  }
  0x13   :  { %s1740_s26 = smov [#allocation2]   ;;  %s1665_s30 = scalar_lea.hbm %s2003_s0, 128 }
  0x14   :  { %s16_s27 = sshll.u32 %s1740_s26, 4  ;;  %p1666_p8 = scmp.ne.s32.totalorder %s2003_s0, %s1665_s30  ;;  %s17_s27 = int_to_ptr.vmem [resolvable:$true] %s16_s27 }
  0x15   :  { %p1669_p9 = scmp.lt.u32.totalorder %s1665_s30, %s2003_s0 }
  0x17   :  { %p1671_p10 = pnand %p1669_p9, %p1666_p8 }
  0x19   :  { %1674 = shalt.err (!%p1671_p10)
}
  0x1a   :  { %s1675_s8 = scalar_lea.vmem %s17_s27, 128  ;;  %p1680_p12 = scmp.lt.s32.totalorder %s17_s27, %s17_s27 }
  0x1b   :  { %p1676_p11 = scmp.ne.s32.totalorder %s17_s27, %s1675_s8  ;;  %p1681_p13 = scmp.lt.s32.totalorder %s1675_s8, %s1675_s8 }
  0x1d   :  { %p1682_p0 = por %p1681_p13, %p1680_p12 }
  0x1f   :  { %p1683_p1 = pnand %p1682_p0, %p1676_p11 }
  0x21   :  { %1686 = shalt.err (!%p1683_p1)
}
  0x22   :  { %s1741_s1 = smov 64   ;;  %s1742_s9 = smov 4  }
  0x23   :  { %22 = dma.hbm_to_vmem [thread:$0]  %s2003_s0, 128, %s17_s27, [#allocation3], %s1741_s1, %s1741_s1, %s1742_s9  }
  0x24   :  { %s1743_s12 = smov [#allocation7]   ;;  %s1687_s16 = scalar_lea.hbm %s2005_s2, 1280 }
  0x25   :  { %s40_s13 = sshll.u32 %s1743_s12, 4  ;;  %p1688_p2 = scmp.ne.s32.totalorder %s2005_s2, %s1687_s16  ;;  %s41_s13 = int_to_ptr.vmem [resolvable:$true] %s40_s13 }
  0x26   :  { %p1691_p3 = scmp.lt.u32.totalorder %s1687_s16, %s2005_s2 }
  0x28   :  { %p1693_p4 = pnand %p1691_p3, %p1688_p2 }
  0x2a   :  { %1696 = shalt.err (!%p1693_p4)
}
  0x2b   :  { %s1697_s21 = scalar_lea.vmem %s41_s13, 1280  ;;  %p1702_p6 = scmp.lt.s32.totalorder %s41_s13, %s41_s13 }
  0x2c   :  { %p1698_p5 = scmp.ne.s32.totalorder %s41_s13, %s1697_s21  ;;  %p1703_p7 = scmp.lt.s32.totalorder %s1697_s21, %s1697_s21 }
  0x2e   :  { %p1704_p8 = por %p1703_p7, %p1702_p6 }
  0x30   :  { %p1705_p9 = pnand %p1704_p8, %p1698_p5 }
  0x32   :  { %1708 = shalt.err (!%p1705_p9)
}
  0x33   :  { %s1744_s0 = smov 256   ;;  %s1745_s22 = smov 16  }
  0x34   :  { %46 = dma.hbm_to_vmem [thread:$0]  %s2005_s2, 1280, %s41_s13, [#allocation6], %s1744_s0, %s1744_s0, %s1745_s22  }
  0x35   :  { %1731 = dma.done.wait [#allocation3], 128  }
  0x36   :  { %1732 = vsyncadd [#allocation3], 4294967168 }
  0x37   :  { %1733 = dma.done.wait [#allocation6], 5376  }
  0x38   :  { %1734 = vsyncadd [#allocation6], 4294961920  ;;  %v1746_v0 = vmov 0   ;;  %v1591_v1 = vld [vmem:[#allocation5 + $0x4] ss:$8 sps:$4 sm:$0xff]   ;;  %vm152_vm0 = vcmask 1045504   ;;  %v65_v62 = vlaneseq }
  0x39   :  { %191 = vmatprep.mubr.bf16.mxu0 %v1746_v0  ;;  %301 = vmatprep.mubr.bf16.mxu1 %v1746_v0  ;;  %v1593_v2 = vld [vmem:[#allocation5 + $0x44] ss:$8 sps:$4 sm:$0xff]   ;;  %v1595_v3 = vld [vmem:[#allocation5] ss:$8 sps:$4 sm:$0xff]   ;;  %v1597_v5 = vld [vmem:[#allocation5 + $0x14] ss:$8 sps:$4 sm:$0xff]  }
  0x3a   :  { %159 = vmatprep.subr.bf16.mxu0 %v1591_v1  ;;  %v1596_v4 = vld [vmem:[#allocation5 + $0x40] ss:$8 sps:$4 sm:$0xff]   ;;  %269 = vmatprep.subr.bf16.mxu1 %v1593_v2  ;;  %v1599_v6 = vld [vmem:[#allocation5 + $0x54] ss:$8 sps:$4 sm:$0xff]   ;;  %v1601_v7 = vld [vmem:[#allocation5 + $0x10] ss:$8 sps:$4 sm:$0xff]  }
  0x3b   :  { %160 = vmatpush1.bf16.msra.mxu0 %v1595_v3  ;;  %270 = vmatpush1.bf16.msra.mxu1 %v1596_v4  ;;  %v1602_v8 = vld [vmem:[#allocation5 + $0x50] ss:$8 sps:$4 sm:$0xff]   ;;  %v1603_v9 = vld [vmem:[#allocation5 + $0x24] ss:$8 sps:$4 sm:$0xff]   ;;  %v1607_v11 = vld [vmem:[#allocation5 + $0x20] ss:$8 sps:$4 sm:$0xff]  }
  0x3c   :  { %161 = vmatprep.subr.bf16.mxu0 %v1597_v5  ;;  %271 = vmatprep.subr.bf16.mxu1 %v1599_v6  ;;  %v1605_v10 = vld [vmem:[#allocation5 + $0x64] ss:$8 sps:$4 sm:$0xff]   ;;  %v1608_v12 = vld [vmem:[#allocation5 + $0x60] ss:$8 sps:$4 sm:$0xff]   ;;  %v57_v17 = vld [vmem:[#allocation2] sm:$0xf] }
  0x3d   :  { %v1609_v13 = vld [vmem:[#allocation5 + $0x34] ss:$8 sps:$4 sm:$0x3f]   ;;  %v1613_v15 = vld [vmem:[#allocation5 + $0x30] ss:$8 sps:$4 sm:$0x3f]   ;;  %v84_v19 = vpack.c.bf16 %v57_v17, %v57_v17 }
  0x3e   :  { %v1611_v14 = vld [vmem:[#allocation5 + $0x74] ss:$8 sps:$4 sm:$0x3f]   ;;  %v1614_v16 = vld [vmem:[#allocation5 + $0x70] ss:$8 sps:$4 sm:$0x3f]  }
  0x3f   :  { %162 = vmatpush1.bf16.msra.mxu0 %v1601_v7  ;;  %272 = vmatpush1.bf16.msra.mxu1 %v1602_v8  ;;  %v58_v18 = vld [vmem:[#allocation2 + $0x4] sm:$0xf]  ;;  %v154_v21 = vsel %vm152_vm0, %v1613_v15, 0  ;;  %v264_v22 = vsel %vm152_vm0, %v1614_v16, 0  ;;  %v1617_v23 = vld [vmem:[#allocation5 + $0x84] ss:$8 sps:$4 sm:$0xff]   ;;  %v104_v24 = vunpack.c.l.b16 %v84_v19 }
  0x40   :  { %163 = vmatprep.subr.bf16.mxu0 %v1603_v9  ;;  %273 = vmatprep.subr.bf16.mxu1 %v1605_v10  ;;  %v85_v20 = vpack.c.bf16 %v58_v18, %v58_v18  ;;  %v1620_v26 = vld [vmem:[#allocation5 + $0xc4] ss:$8 sps:$4 sm:$0xff]   ;;  %vm107_vm1 = vcmask 1041409   ;;  %v1615_v29 = vld [vmem:[#allocation5 + $0x80] ss:$8 sps:$4 sm:$0xff]   ;;  %vm148_vm2 = vcmask 490496  }
  0x41   :  { %v219_v28 = vrot.slane %v104_v24, 1  ;;  %v1618_v32 = vld [vmem:[#allocation5 + $0xc0] ss:$8 sps:$4 sm:$0xff]   ;;  %v1623_v35 = vld [vmem:[#allocation5 + $0x94] ss:$8 sps:$4 sm:$0xff]   ;;  %v329_v43 = vrot.slane %v104_v24, 2 }
  0x42   :  { %v105_v25 = vunpack.c.l.b16 %v85_v20  ;;  %v1626_v36 = vld [vmem:[#allocation5 + $0xd4] ss:$8 sps:$4 sm:$0xff]   ;;  %v1621_v37 = vld [vmem:[#allocation5 + $0x90] ss:$8 sps:$4 sm:$0xff]   ;;  %v1629_v39 = vld [vmem:[#allocation5 + $0xa4] ss:$8 sps:$4 sm:$0xff]  }
  0x43   :  { %164 = vmatpush1.bf16.msra.mxu0 %v1607_v11  ;;  %274 = vmatpush1.bf16.msra.mxu1 %v1608_v12  ;;  %v1624_v38 = vld [vmem:[#allocation5 + $0xd0] ss:$8 sps:$4 sm:$0xff]   ;;  %v1632_v40 = vld [vmem:[#allocation5 + $0xe4] ss:$8 sps:$4 sm:$0xff]   ;;  %v1627_v41 = vld [vmem:[#allocation5 + $0xa0] ss:$8 sps:$4 sm:$0xff]  }
  0x44   :  { %1322 = vmatprep.subr.msk.bf16.mxu0 %vm152_vm0, %v1609_v13  ;;  %1332 = vmatprep.subr.msk.bf16.mxu1 %vm152_vm0, %v1611_v14  ;;  %v106_v27 = vrot.slane %v105_v25, 7  ;;  %v220_v31 = vsel %vm107_vm1, %v105_v25, %v219_v28  ;;  %v1630_v42 = vld [vmem:[#allocation5 + $0xe0] ss:$8 sps:$4 sm:$0xff]   ;;  %v330_v44 = vrot.slane %v105_v25, 1  ;;  %v440_v45 = vrot.slane %v104_v24, 3  ;;  %v1839_v58 = vld [vmem:[#allocation7 + $0x10] sm:$0xff] }
  0x45   :  { %v221_v34 = vpack.c.b16 %v220_v31, %v220_v31  ;;  %v441_v46 = vrot.slane %v105_v25, 2  ;;  %v1633_v47 = vld [vmem:[#allocation5 + $0xb4] ss:$8 sps:$4 sm:$0x3f]   ;;  %v1837_v57 = vld [vmem:[#allocation7] sm:$0xff]  ;;  %vm600_vm3 = vcmask 1043456  }
  0x46   :  { %v108_v30 = vsel %vm107_vm1, %v106_v27, %v104_v24  ;;  %v1635_v48 = vld [vmem:[#allocation5 + $0xf4] ss:$8 sps:$4 sm:$0x3f]   ;;  %v1637_v49 = vld [vmem:[#allocation5 + $0xb0] ss:$8 sps:$4 sm:$0x3f]   ;;  %v331_v51 = vsel %vm107_vm1, %v330_v44, %v329_v43 }
  0x47   :  { %166 = vmatpush1.bf16.msra.mxu0 %v154_v21  ;;  %276 = vmatpush1.bf16.msra.mxu1 %v264_v22  ;;  %v109_v33 = vpack.c.b16 %v108_v30, %v108_v30  ;;  %v1638_v50 = vld [vmem:[#allocation5 + $0xf0] ss:$8 sps:$4 sm:$0x3f]   ;;  %v442_v52 = vsel %vm107_vm1, %v441_v46, %v440_v45  ;;  %v375_v53 = vsel %vm152_vm0, %v1637_v49, 0  ;;  %v332_v55 = vpack.c.b16 %v331_v51, %v331_v51  ;;  %s1747_s2 = smov 116   ;;  %v60_v2 = vld [vmem:[#allocation7 + $0x8] sm:$0xff] }
  0x48   :  { %380 = vmatprep.subr.bf16.mxu0 %v1617_v23  ;;  %491 = vmatprep.subr.bf16.mxu1 %v1620_v26  ;;  %v486_v54 = vsel %vm152_vm0, %v1638_v50, 0  ;;  %v443_v56 = vpack.c.b16 %v442_v52, %v442_v52  ;;  %v627_v59 = vrot.slane %v1837_v57, 4  ;;  %v628_v60 = vrot.slane %v1839_v58, 4  ;;  %s1749_s25 = smov 127   ;;  %s1750_s26 = smov 1  }
  0x49   :  { %v95_v63 = vshrl.u32 %v65_v62, 7  ;;  %vm552_vm4 = vcmask 1040384   ;;  %vm555_vm5 = vcmask 1041408   ;;  %vm558_vm6 = vcmask 1042432   ;;  %s1751_s27 = smov 104   ;;  %s1753_s28 = smov 96  }
  0x4a   :  { %1323 = vmatmul.mubr.msk.bf16.vlgmr.msra.gmra.mrb[0].mxu0 %vm148_vm2, %v109_v33  ;;  %1333 = vmatmul.mubr.msk.bf16.vlgmr.msra.gmra.mrb[0].mxu1 %vm148_vm2, %v221_v34  ;;  %v1844_v61 = vsel %vm600_vm3, %v627_v59, %v628_v60  ;;  %v1855_v33 = vld [vmem:[#allocation7 + $0x20] sm:$0xff]  ;;  %vm644_vm7 = vcmask 97280   ;;  %vm585_vm8 = vcmask 523264   ;;  %vm1748_vm9 = vmmov 1   ;;  %s1758_s29 = smov [#allocation8]  }
  0x4b   :  { %381 = vmatpush1.bf16.msra.mxu0 %v1615_v29  ;;  %492 = vmatpush1.bf16.msra.mxu1 %v1618_v32  ;;  %v213_v1 = vsub.s32 1, %v95_v63  ;;  %v323_v31 = vsub.s32 2, %v95_v63  ;;  %v434_v32 = vsub.s32 3, %v95_v63  ;;  %v630_v34 = vrot.slane %v1855_v33, 4  ;;  %vm1484_vm10 = vmpackc.low %vm600_vm3, %vm1748_vm9  ;;  %s1303_s30 = sshll.u32 %s1758_s29, 4  ;;  %s1304_s30 = int_to_ptr.vmem [resolvable:$true] %s1303_s30 }
  0x4c   :  { %382 = vmatprep.subr.bf16.mxu0 %v1623_v35  ;;  %493 = vmatprep.subr.bf16.mxu1 %v1626_v36  ;;  %vm610_vm11 = vcmask 7168   ;;  %vm619_vm12 = vcmask 1039360   ;;  %vm1250_vm9 = vcmask 516096   ;;  %s1709_s4 = scalar_lea.vmem %s1304_s30, 32  ;;  %p1714_p11 = scmp.lt.s32.totalorder %s1304_s30, %s1304_s30 }
  0x4d   :  { %412 = vmatprep.mubr.bf16.mxu0 %v1746_v0  ;;  %523 = vmatprep.mubr.bf16.mxu1 %v1746_v0  ;;  %v96_v0 = vsub.s32 0, %v95_v63  ;;  %v214_v4 = vrot.slane %v1837_v57, %v213_v1  ;;  %v218_v6 = vrot.slane %v60_v2, %v213_v1  ;;  %v324_v35 = vrot.slane %v1837_v57, %v323_v31  ;;  %vm1907_vm13 = vmneg %vm610_vm11  ;;  %p1710_p10 = scmp.ne.s32.totalorder %s1304_s30, %s1709_s4  ;;  %p1715_p12 = scmp.lt.s32.totalorder %s1709_s4, %s1709_s4 }
  0x4e   :  { %636 = vrot.lane.b32.xlu1 %v1844_v61, %s1747_s2  ;;  %v435_v36 = vrot.slane %v1837_v57, %v434_v32  ;;  %vm1490_vm14 = vmpackc.low %vm600_vm3, %vm1907_vm13 }
  0x4f   :  { %383 = vmatpush1.bf16.msra.mxu0 %v1621_v37  ;;  %494 = vmatpush1.bf16.msra.mxu1 %v1624_v38  ;;  %v97_v3 = vrot.slane %v1837_v57, %v96_v0  ;;  %v101_v5 = vrot.slane %v60_v2, %v96_v0  ;;  %v1861_v37 = vsel %vm600_vm3, %v628_v60, %v630_v34  ;;  %vm1496_vm15 = vmpackc.low %vm600_vm3, %vm619_vm12  ;;  %p1716_p13 = por %p1715_p12, %p1714_p11 }
  0x50   :  { %384 = vmatprep.subr.bf16.mxu0 %v1629_v39  ;;  %495 = vmatprep.subr.bf16.mxu1 %v1632_v40  ;;  %v328_v38 = vrot.slane %v60_v2, %v323_v31  ;;  %v439_v39 = vrot.slane %v60_v2, %v434_v32  ;;  %v1865_v40 = vld [vmem:[#allocation7 + $0x30] sm:$0xff] }
  0x51   :  { %p1717_p0 = pnand %p1716_p13, %p1710_p10 }
  0x52   :  { %638 = vrot.lane.b32.xlu1 %v1861_v37, %s1747_s2 }
  0x53   :  { %385 = vmatpush1.bf16.msra.mxu0 %v1627_v41  ;;  %496 = vmatpush1.bf16.msra.mxu1 %v1630_v42  ;;  %v632_v41 = vrot.slane %v1865_v40, 4 }
  0x54   :  { %1342 = vmatprep.subr.msk.bf16.mxu0 %vm152_vm0, %v1633_v47  ;;  %1352 = vmatprep.subr.msk.bf16.mxu1 %vm152_vm0, %v1635_v48 }
  0x55   :  { %v1871_v48 = vsel %vm600_vm3, %v630_v34, %v632_v41  ;;  %v1752_v34 = vmov 36  }
  0x56   :  { %640 = vrot.lane.b32.xlu1 %v1871_v48, %s1747_s2  ;;  %1568 = vset.pattern.permute.xlu0 %v1752_v34 }
  0x57   :  { %387 = vmatpush1.bf16.msra.mxu0 %v375_v53  ;;  %498 = vmatpush1.bf16.msra.mxu1 %v486_v54 }
  0x58   :  { %1569 = vset.pattern.permute.xlu1 %v1752_v34 }
  0x5a   :  { %1343 = vmatmul.mubr.msk.bf16.vlgmr.msra.gmra.mrb[4].mxu0 %vm148_vm2, %v332_v55  ;;  %1353 = vmatmul.mubr.msk.bf16.vlgmr.msra.gmra.mrb[4].mxu1 %vm148_vm2, %v443_v56 }
 0x11d   :  { %v193_v7 = vpop.f32.mrb[0].mxu0  ;;  %v303_v8 = vpop.f32.mrb[0].mxu1 }
 0x11e   :  { %v194_v9 = vadd.f32 %v193_v7, %v97_v3  ;;  %v304_v10 = vadd.f32 %v303_v8, %v214_v4  ;;  %v195_v11 = vpop.f32.mrb[1].mxu0  ;;  %v305_v12 = vpop.f32.mrb[1].mxu1 }
 0x11f   :  { %v196_v13 = vadd.f32 %v195_v11, %v101_v5  ;;  %v306_v14 = vadd.f32 %v305_v12, %v218_v6  ;;  %v197_v15 = vpop.f32.mrb[2].mxu0  ;;  %v307_v16 = vpop.f32.mrb[2].mxu1 }
 0x120   :  { %v200_v17 = vmax.f32 %v194_v9, 0.0  ;;  %v310_v18 = vmax.f32 %v304_v10, 0.0  ;;  %v198_v19 = vpop.f32.mrb[3].mxu0  ;;  %v308_v20 = vpop.f32.mrb[3].mxu1 }
 0x121   :  { %v201_v21 = vmax.f32 %v196_v13, 0.0  ;;  %v311_v22 = vmax.f32 %v306_v14, 0.0  ;;  %v637_v16 = vpop.permute.xlu1 %636 }
 0x122   :  { %v563_v23 = vrot.slane %v200_v17, 1  ;;  %v536_v24 = vrot.slane %v310_v18, 7  ;;  %1424 = vmatprep.mubr.msk.f32.mxu0 %vm644_vm7, %v637_v16 }
 0x123   :  { %v564_v25 = vrot.slane %v201_v21, 1  ;;  %v537_v26 = vrot.slane %v311_v22, 7 }
 0x124   :  { %v553_v27 = vsel %vm552_vm4, %v200_v17, %v536_v24  ;;  %v575_v28 = vsel %vm552_vm4, %v563_v23, %v310_v18 }
 0x125   :  { %v554_v29 = vsel %vm552_vm4, %v201_v21, %v537_v26  ;;  %v576_v30 = vsel %vm552_vm4, %v564_v25, %v311_v22  ;;  %v1882_v21 = vld [vmem:[#allocation7 + $0x40] sm:$0xff] }
 0x12d   :  { %v414_v42 = vpop.f32.mrb[4].mxu0  ;;  %v525_v43 = vpop.f32.mrb[4].mxu1 }
 0x12e   :  { %v415_v44 = vadd.f32 %v414_v42, %v324_v35  ;;  %v526_v45 = vadd.f32 %v525_v43, %v435_v36  ;;  %v416_v46 = vpop.f32.mrb[5].mxu0  ;;  %v527_v47 = vpop.f32.mrb[5].mxu1 }
 0x12f   :  { %v417_v49 = vadd.f32 %v416_v46, %v328_v38  ;;  %v528_v50 = vadd.f32 %v527_v47, %v439_v39  ;;  %v418_v51 = vpop.f32.mrb[6].mxu0  ;;  %v529_v52 = vpop.f32.mrb[6].mxu1 }
 0x130   :  { %v421_v53 = vmax.f32 %v415_v44, 0.0  ;;  %v532_v54 = vmax.f32 %v526_v45, 0.0  ;;  %v419_v55 = vpop.f32.mrb[7].mxu0  ;;  %v530_v56 = vpop.f32.mrb[7].mxu1 }
 0x131   :  { %v422_v59 = vmax.f32 %v417_v49, 0.0  ;;  %v533_v60 = vmax.f32 %v528_v50, 0.0 }
 0x132   :  { %v542_v63 = vrot.slane %v421_v53, 6  ;;  %v567_v0 = vrot.slane %v421_v53, 7  ;;  %v548_v1 = vrot.slane %v532_v54, 5  ;;  %v571_v2 = vrot.slane %v532_v54, 6 }
 0x133   :  { %v543_v3 = vrot.slane %v422_v59, 6  ;;  %v568_v4 = vrot.slane %v422_v59, 7  ;;  %v549_v5 = vrot.slane %v533_v60, 5  ;;  %v572_v6 = vrot.slane %v533_v60, 6 }
 0x134   :  { %v556_v7 = vsel %vm555_vm5, %v553_v27, %v542_v63  ;;  %v577_v8 = vsel %vm555_vm5, %v575_v28, %v567_v0  ;;  %v1886_v27 = vrot.slane %v1882_v21, 4 }
 0x135   :  { %v559_v9 = vsel %vm558_vm6, %v556_v7, %v548_v1  ;;  %v579_v10 = vsel %vm558_vm6, %v577_v8, %v571_v2  ;;  %v578_v11 = vsel %vm555_vm5, %v576_v30, %v568_v4  ;;  %v557_v12 = vsel %vm555_vm5, %v554_v29, %v543_v3  ;;  %v639_v30 = vpop.permute.xlu1 %638 }
 0x136   :  { %v1553_v13 = vpack.i.bf16 %v579_v10, %v559_v9  ;;  %v580_v14 = vsel %vm558_vm6, %v578_v11, %v572_v6  ;;  %v560_v15 = vsel %vm558_vm6, %v557_v12, %v549_v5  ;;  %v635_v31 = vsel %vm600_vm3, %v632_v41, %v1886_v27  ;;  %vm1509_vm6 = vmpackc.low %vm1907_vm13, %vm1907_vm13 }
 0x137   :  { %vm1755_vm5 = vmmov 0   ;;  %v1756_v3 = vmov 0.0  }
 0x138   :  { %1554 = vrot.lane.b32.xlu0 %v1553_v13, %s1741_s1  ;;  %1458 = vmatprep.mubr.msk.f32.mxu1 %vm1755_vm5, %v1756_v3 }
 0x139   :  { %v641_v32 = vpop.permute.xlu1 %640 }
 0x13c   :  { %593 = vrot.lane.b32.xlu0 %v580_v14, %s1741_s1 }
 0x1aa   :  { %v1555_v17 = vpop.permute.xlu0 %1554 }
 0x1ab   :  { %v1557_v18 = vunpack.i.h.bf16 %v1555_v17  ;;  %v1556_v19 = vunpack.i.l.bf16 %v1555_v17 }
 0x1ad   :  { %v591_v20 = vsel %vm585_vm8, %v1556_v19, %v579_v10  ;;  %v586_v24 = vsel %vm585_vm8, %v559_v9, %v1557_v18 }
 0x1ae   :  { %v594_v22 = vpop.permute.xlu0 %593  ;;  %v598_v23 = vrot.slane %v591_v20, 4 }
 0x1af   :  { %v596_v25 = vsel %vm585_vm8, %v560_v15, %v594_v22  ;;  %vm1254_vm8 = vcmask 517121  }
 0x1b0   :  { %v601_v26 = vsel %vm600_vm3, %v586_v24, %v598_v23 }
 0x1b1   :  { %v1483_v28 = vpack.c.bf16 %v596_v25, %v601_v26  ;;  %v1563_v29 = vpack.i.bf16 %v601_v26, %v596_v25 }
 0x1b3   :  { %1564 = vrot.lane.b32.xlu1 %v1563_v29, %s1749_s25  ;;  %1559 = vrot.lane.b32.xlu0 %v1563_v29, %s1750_s26 }
 0x1b4   :  { %1485 = vmatprep.subr.msk.bf16.mxu0 %vm1484_vm10, %v1483_v28 }
 0x1b5   :  { %1488 = vmatpush3.bf16.msk.msra.mxu0 %vm1484_vm10, %v1483_v28  ;;  %vm1282_vm10 = vcmask 9216  }
 0x1b7   :  { %642 = vrot.lane.b32.xlu0 %v635_v31, %s1747_s2  ;;  %838 = vrot.lane.b32.xlu1 %v1861_v37, %s1751_s27 }
 0x1b8   :  { %1425 = vmatmul.mubr.msk.f32.vlgmr.msra.gmra.mrb[8].mxu0 %vm644_vm7, %v639_v30  ;;  %v1757_v30 = vmov 96  }
 0x1b9   :  { %1427 = vmatprep.mubr.msk.f32.mxu0 %vm644_vm7, %v641_v32 }
 0x1bb   :  { %836 = vrot.lane.b32.xlu0 %v1844_v61, %s1751_s27  ;;  %842 = vrot.lane.b32.xlu1 %v635_v31, %s1751_s27 }
 0x1bf   :  { %840 = vrot.lane.b32.xlu0 %v1871_v48, %s1751_s27  ;;  %948 = vperm.xlu1 %1569, %v1839_v58  }
 0x1c3   :  { %951 = vperm.xlu1 %1569, %v1855_v33   ;;  %945 = vperm.xlu0 %1568, %v1837_v57  }
 0x1c7   :  { %957 = vperm.xlu1 %1569, %v1882_v21   ;;  %954 = vperm.xlu0 %1568, %v1865_v40  }
 0x1cb   :  { %1020 = vrot.lane.b32.xlu1 %v1886_v27, %s1753_s28  ;;  %1590 = vset.pattern.permute.xlu0 %v1757_v30 }
 0x225   :  { %v1565_v35 = vpop.permute.xlu1 %1564  ;;  %v1560_v36 = vpop.permute.xlu0 %1559 }
 0x226   :  { %v1566_v39 = vunpack.i.l.bf16 %v1565_v35  ;;  %v1562_v41 = vunpack.i.h.bf16 %v1560_v36  ;;  %v1561_v58 = vunpack.i.l.bf16 %v1560_v36  ;;  %v1567_v42 = vunpack.i.h.bf16 %v1565_v35 }
 0x228   :  { %v621_v33 = vsel %vm619_vm12, %v1566_v39, 0.0  ;;  %v612_v57 = vsel %vm610_vm11, 0.0, %v1561_v58 }
 0x229   :  { %v1489_v40 = vpack.c.bf16 %v612_v57, %v1562_v41  ;;  %v643_v43 = vpop.permute.xlu0 %642  ;;  %v1495_v44 = vpack.c.bf16 %v621_v33, %v1567_v42  ;;  %v839_v46 = vpop.permute.xlu1 %838 }
 0x22a   :  { %1428 = vmatmul.mubr.msk.f32.gmra.mrb[10].mxu0 %vm644_vm7, %v643_v43 }
 0x22b   :  { %1491 = vmatprep.subr.msk.bf16.mxu0 %vm1490_vm14, %v1489_v40  ;;  %1434 = vmatprep.mubr.msk.f32.mxu0 %vm644_vm7, %v1844_v61  ;;  %v1754_v61 = vmov 0.0|0.0  }
 0x22c   :  { %1494 = vmatpush3.bf16.msk.msra.mxu0 %vm1490_vm14, %v1489_v40  ;;  %1501 = vmatprep.subr.bf16.mxu1 %v1754_v61 }
 0x22d   :  { %1497 = vmatprep.subr.msk.bf16.mxu0 %vm1496_vm15, %v1495_v44  ;;  %v837_v45 = vpop.permute.xlu0 %836  ;;  %v843_v49 = vpop.permute.xlu1 %842 }
 0x22f   :  { %1435 = vmatmul.mubr.msk.f32.vlgmr.msra.gmra.mrb[8].mxu0 %vm644_vm7, %v1861_v37 }
 0x230   :  { %1500 = vmatpush3.bf16.msk.msra.mxu0 %vm1496_vm15, %v1495_v44  ;;  %1437 = vmatprep.mubr.msk.f32.mxu0 %vm644_vm7, %v1871_v48  ;;  %v66_v48 = vand.u32 127, %v65_v62 }
 0x231   :  { %v841_v47 = vpop.permute.xlu0 %840 }
 0x232   :  { %v71_v52 = vand.u32 63, %v66_v48 }
 0x233   :  { %1438 = vmatmul.mubr.msk.f32.gmra.mrb[10].mxu0 %vm644_vm7, %v635_v31 }
 0x234   :  { %1444 = vmatprep.mubr.msk.f32.mxu0 %vm644_vm7, %v837_v45  ;;  %vm1933_vm0 = vcmp.ge.s32.totalorder %v71_v52, 1  ;;  %vm1937_vm1 = vcmp.le.s32.totalorder %v71_v52, 60 }
 0x235   :  { %vm81_vm2 = vmand %vm1933_vm0, %vm1937_vm1 }
 0x236   :  { %v1950_v7 = vsel %vm81_vm2, 1.0, %v1756_v3 }
 0x237   :  { %1445 = vmatmul.mubr.msk.f32.vlgmr.msra.gmra.mrb[8].mxu0 %vm644_vm7, %v839_v46 }
 0x238   :  { %1447 = vmatprep.mubr.msk.f32.mxu0 %vm644_vm7, %v841_v47 }
 0x23b   :  { %1448 = vmatmul.mubr.msk.f32.gmra.mrb[10].mxu0 %vm644_vm7, %v843_v49  ;;  %vm1517_vm7 = vmpackc.low %vm619_vm12, %vm619_vm12 }
 0x23e   :  { %v949_v37 = vpop.permute.xlu1 %948 }
 0x23f   :  { %v960_v53 = vrot.slane %v949_v37, 4 }
 0x242   :  { %v952_v50 = vpop.permute.xlu1 %951  ;;  %v946_v51 = vpop.permute.xlu0 %945 }
 0x243   :  { %v962_v54 = vrot.slane %v952_v50, 4  ;;  %v959_v59 = vrot.slane %v946_v51, 4 }
 0x245   :  { %v963_v2 = vsel %vm600_vm3, %v960_v53, %v962_v54  ;;  %v961_v6 = vsel %vm600_vm3, %v959_v59, %v960_v53 }
 0x246   :  { %v958_v60 = vpop.permute.xlu1 %957  ;;  %v955_v63 = vpop.permute.xlu0 %954 }
 0x247   :  { %v966_v62 = vrot.slane %v958_v60, 4  ;;  %v964_v0 = vrot.slane %v955_v63, 4 }
 0x249   :  { %v967_v12 = vsel %vm600_vm3, %v964_v0, %v966_v62  ;;  %v965_v16 = vsel %vm600_vm3, %v962_v54, %v964_v0  ;;  %vm1022_vm3 = vcmask 261120  }
 0x24a   :  { %v1021_v29 = vpop.permute.xlu1 %1020 }
 0x30a   :  { %v1446_v1 = vpop.f32.mrb[8].mxu0 }
 0x30b   :  { %v973_v4 = vadd.f32 %v1446_v1, %v963_v2  ;;  %v921_v5 = vpop.f32.mrb[9].mxu0 }
 0x30c   :  { %v972_v8 = vadd.f32 %v961_v6, %v921_v5 }
 0x30d   :  { %v977_v9 = vmax.f32 %v973_v4, 0.0 }
 0x30e   :  { %v976_v10 = vmax.f32 %v972_v8, 0.0  ;;  %v1449_v11 = vpop.f32.mrb[10].mxu0 }
 0x30f   :  { %v981_v13 = vmul.f32 %v1950_v7, %v977_v9  ;;  %v975_v14 = vadd.f32 %v1449_v11, %v967_v12  ;;  %v931_v15 = vpop.f32.mrb[11].mxu0 }
 0x310   :  { %v980_v17 = vmul.f32 %v1950_v7, %v976_v10  ;;  %v974_v18 = vadd.f32 %v965_v16, %v931_v15 }
 0x311   :  { %v979_v19 = vmax.f32 %v975_v14, 0.0 }
 0x312   :  { %v978_v20 = vmax.f32 %v974_v18, 0.0  ;;  %v1580_v22 = vpack.i.bf16 %v981_v13, %v980_v17  ;;  %v1502_v23 = vpack.c.bf16 %v981_v13, %v980_v17 }
 0x313   :  { %v983_v24 = vmul.f32 %v1950_v7, %v979_v19 }
 0x314   :  { %v982_v25 = vmul.f32 %v1950_v7, %v978_v20  ;;  %1581 = vrot.lane.b32.xlu1 %v1580_v22, %s1749_s25  ;;  %1571 = vrot.lane.b32.xlu0 %v1580_v22, %s1750_s26 }
 0x315   :  { %1503 = vmatpush3.bf16.msra.mxu1 %v1502_v23 }
 0x316   :  { %1504 = vmatprep.subr.bf16.mxu1 %v1754_v61  ;;  %v1575_v26 = vpack.i.bf16 %v983_v24, %v982_v25  ;;  %v1505_v28 = vpack.c.bf16 %v983_v24, %v982_v25 }
 0x318   :  { %1576 = vrot.lane.b32.xlu0 %v1575_v26, %s1750_s26  ;;  %1167 = vrot.lane.b32.xlu1 %v1886_v27, %s1741_s1 }
 0x319   :  { %1506 = vmatpush3.bf16.msra.mxu1 %v1505_v28 }
 0x31a   :  { %1507 = vmatprep.subr.bf16.mxu1 %v1754_v61 }
 0x31c   :  { %1586 = vrot.lane.b32.xlu0 %v1575_v26, %s1749_s25  ;;  %1459 = vmatmul.mubr.msk.f32.vlgmr.msra.gmra.mrb[8].mxu1 %vm1022_vm3, %v1021_v29 }
 0x31d   :  { %1469 = vmatprep.mubr.msk.f32.mxu1 %vm1755_vm5, %v1756_v3 }
 0x320   :  { %1243 = vperm.xlu0 %1590, %v1882_v21  }
 0x386   :  { %v1572_v31 = vpop.permute.xlu0 %1571  ;;  %v1582_v36 = vpop.permute.xlu1 %1581 }
 0x387   :  { %v1574_v32 = vunpack.i.h.bf16 %v1572_v31  ;;  %v1573_v34 = vunpack.i.l.bf16 %v1572_v31  ;;  %v1584_v42 = vunpack.i.h.bf16 %v1582_v36  ;;  %v1583_v33 = vunpack.i.l.bf16 %v1582_v36 }
 0x389   :  { %v1508_v35 = vpack.c.bf16 %v1574_v32, %v1573_v34  ;;  %v1516_v21 = vpack.c.bf16 %v1584_v42, %v1583_v33 }
 0x38a   :  { %v1577_v39 = vpop.permute.xlu0 %1576  ;;  %v1168_v45 = vpop.permute.xlu1 %1167 }
 0x38b   :  { %v1579_v41 = vunpack.i.h.bf16 %v1577_v39  ;;  %v1578_v58 = vunpack.i.l.bf16 %v1577_v39  ;;  %1510 = vmatpush3.bf16.msk.msra.mxu1 %vm1509_vm6, %v1508_v35 }
 0x38c   :  { %1511 = vmatprep.subr.bf16.mxu1 %v1754_v61 }
 0x38d   :  { %v1512_v57 = vpack.c.bf16 %v1579_v41, %v1578_v58 }
 0x38e   :  { %v1587_v40 = vpop.permute.xlu0 %1586 }
 0x38f   :  { %1514 = vmatpush3.bf16.msk.msra.mxu1 %vm1509_vm6, %v1512_v57  ;;  %v1589_v38 = vunpack.i.h.bf16 %v1587_v40  ;;  %v1588_v43 = vunpack.i.l.bf16 %v1587_v40 }
 0x390   :  { %1515 = vmatprep.subr.bf16.mxu1 %v1754_v61 }
 0x391   :  { %v1520_v44 = vpack.c.bf16 %v1589_v38, %v1588_v43 }
 0x392   :  { %1470 = vmatmul.mubr.msk.f32.vlgmr.msra.gmra.mrb[10].mxu1 %vm1022_vm3, %v1886_v27 }
 0x393   :  { %1518 = vmatpush3.bf16.msk.msra.mxu1 %vm1517_vm7, %v1516_v21  ;;  %1480 = vmatprep.mubr.msk.f32.mxu1 %vm1755_vm5, %v1756_v3 }
 0x394   :  { %1519 = vmatprep.subr.bf16.mxu1 %v1754_v61 }
 0x397   :  { %1522 = vmatpush3.bf16.msk.msra.mxu1 %vm1517_vm7, %v1520_v44 }
 0x39a   :  { %1481 = vmatmul.mubr.msk.f32.vlgmr.msra.gmra.mrb[12].mxu1 %vm1022_vm3, %v1168_v45 }
 0x39f   :  { %v1244_v50 = vpop.permute.xlu0 %1243 }
 0x3a0   :  { %v1245_v51 = vrot.slane %v1244_v50, 4 }
 0x3ef   :  { %v1091_v46 = vpop.f32.mrb[8].mxu1 }
 0x3f0   :  { %v1460_v47 = vpop.f32.mrb[9].mxu1 }
 0x465   :  { %v1163_v49 = vpop.f32.mrb[10].mxu1 }
 0x466   :  { %v1164_v37 = vadd.f32 %v1163_v49, %v1091_v46  ;;  %v1471_v48 = vpop.f32.mrb[11].mxu1 }
 0x46d   :  { %v1237_v52 = vpop.f32.mrb[12].mxu1 }
 0x46e   :  { %v1241_v27 = vadd.f32 %v1237_v52, %v1164_v37  ;;  %v1482_v53 = vpop.f32.mrb[13].mxu1 }
 0x470   :  { %v1247_v54 = vadd.f32 %v1245_v51, %v1241_v27 }
 0x472   :  { %v1248_v55 = vmax.f32 %v1247_v54, 0.0 }
 0x474   :  { %v1249_v61 = vmul.f32 %v1950_v7, %v1248_v55 }
 0x476   :  { %1264 = vrot.lane.b32.xlu1 %v1249_v61, %s1741_s1  ;;  %v1255_v56 = vsel %vm1254_vm8, %v1249_v61, 0.0  ;;  %v1251_v62 = vsel %vm1250_vm9, %v1249_v61, 0.0 }
 0x477   :  { %1256 = vadd.xlane.f32.xlu0 %v1255_v56 }
 0x4e8   :  { %v1265_v59 = vpop.permute.xlu1 %1264 }
 0x4e9   :  { %v1270_v60 = vsel %vm1254_vm8, %v1265_v59, 0.0  ;;  %v1267_v63 = vsel %vm1250_vm9, %v1265_v59, 0.0 }
 0x4ea   :  { %1271 = vadd.xlane.f32.xlu1 %v1270_v60  ;;  %1268 = vadd.xlane.f32.xlu0 %v1267_v63 }
 0x4ee   :  { %1252 = vadd.xlane.f32.xlu1 %v1251_v62 }
 0x504   :  { %v1257_v0 = vpop.xlane.xlu0 %1256 }
 0x505   :  { %v1259_v4 = vrot.slane %v1257_v0, 1 }
 0x577   :  { %v1272_v1 = vpop.xlane.xlu1 %1271  ;;  %v1269_v3 = vpop.xlane.xlu0 %1268 }
 0x578   :  { %v1274_v2 = vrot.slane %v1272_v1, 1 }
 0x57a   :  { %v1276_v5 = vsel %vm610_vm11, %v1269_v3, %v1274_v2 }
 0x57b   :  { %v1277_v6 = vmul.f32 0.016666668, %v1276_v5  ;;  %v1253_v7 = vpop.xlane.xlu1 %1252 }
 0x57c   :  { %v1261_v8 = vsel %vm610_vm11, %v1253_v7, %v1259_v4 }
 0x57d   :  { %v1279_v9 = vrot.slane %v1277_v6, 7  ;;  %v1262_v10 = vmul.f32 0.016666668, %v1261_v8 }
 0x57f   :  { %v1281_v11 = vsel %vm552_vm4, %v1262_v10, %v1279_v9 }
 0x580   :  { %v1283_v12 = vsel %vm1282_vm10, %v1281_v11, -inf }
 0x581   :  { %1284 = vmax.xlane.f32.xlu0 %v1283_v12 }
 0x60e   :  { %v1285_v13 = vpop.xlane.xlu0 %1284 }
 0x60f   :  { %v1286_v14 = vsub.f32 %v1281_v11, %v1285_v13 }
 0x611   :  { %v1287_v15 = vmul.f32 1.442695, %v1286_v14 }
 0x613   :  { %1639 = vpow2.f32 %v1287_v15 }
 0x61d   :  { %v1640_v16 = vpop.eup %1639 }
 0x61e   :  { %v1289_v17 = vsel %vm1282_vm10, %v1640_v16, 0.0 }
 0x61f   :  { %1290 = vadd.xlane.f32.xlu1 %v1289_v17 }
 0x6ac   :  { %v1291_v18 = vpop.xlane.xlu1 %1290 }
 0x6ad   :  { %1641 = vlog2.f32 %v1291_v18 }
 0x6b7   :  { %v1642_v19 = vpop.eup %1641 }
 0x6b8   :  { %v1293_v20 = vmul.f32 0.6931472, %v1642_v19 }
 0x6ba   :  { %v1294_v22 = vadd.f32 %v1293_v20, %v1285_v13 }
 0x6bc   :  { %v1295_v23 = vsub.f32 %v1281_v11, %v1294_v22 }
 0x6be   :  { %1296 = vst.msk [vmem:[#allocation8] sm:$0x3] %vm1282_vm10, %v1295_v23 }
 0x6bf   :  { %1720 = shalt.err (!%p1717_p0)
}
 0x6c0   :  { %s1721_s7 = scalar_lea.hbm %s2006_s3, 32 }
 0x6c1   :  { %p1722_p1 = scmp.ne.s32.totalorder %s2006_s3, %s1721_s7  ;;  %p1725_p2 = scmp.lt.u32.totalorder %s1721_s7, %s2006_s3 }
 0x6c3   :  { %p1727_p3 = pnand %p1725_p2, %p1722_p1 }
 0x6c5   :  { %1730 = shalt.err (!%p1727_p3)
}
 0x6c6   :  { %1306 = dma.vmem_to_hbm [thread:$0]  %s1304_s30, 32, %s2006_s3, [#allocation4]  }
 0x6c7   :  { %1735 = dma.done.wait [#allocation4], 32  }
 0x6c8   :  { %1736 = vsyncadd [#allocation4], 4294967264 }
 0x6c9   :  { %1310 = vsyncpa [#allocation3], 1 }
 0x6ca   :  { %1311 = vsyncpa [#allocation6], 1 }
 0x6cb   :  { %1312 = vsyncpa [#allocation4], 1 }

</bundles_post_ra>
